<compile_context>
chip_gen: v6e
topology: v6e:2x2x1
jax: 0.10.0
libtpu: 0.0.40
codegen_flags: <defaults>
</compile_context>

<pallas_src>
from functools import partial

import jax
import jax.numpy as jnp
from jax.experimental import pallas as pl
from jax.experimental.pallas import tpu as pltpu


def _round_up(x, m):
    return ((x + m - 1) // m) * m


def _mlp_kernel(*refs, num_hidden, apply_bn, b_real, bn_eps):
    """Fused MLP: [Linear (+BatchNorm1d train-mode) + ELU] * num_hidden + Linear.

    refs = (x_ref, w0_ref, b0_ref, ..., wL_ref, bL_ref, out_ref), all padded to
    (8, 128)-friendly shapes.  Batch padding is handled via a row mask for BN.
    """
    x_ref = refs[0]
    out_ref = refs[-1]
    param_refs = refs[1:-1]

    h = x_ref[...]  # (B_pad, K_pad) f32
    b_pad = h.shape[0]

    if apply_bn and b_pad != b_real:
        # Row mask selecting the real batch rows (padded rows are excluded from
        # the BatchNorm statistics).  Hoisted out of the layer loop.
        row_ids = jax.lax.broadcasted_iota(jnp.int32, (b_pad, 1), 0)
        row_mask = (row_ids < b_real).astype(jnp.float32)
    else:
        row_mask = None

    inv_b = 1.0 / float(b_real)

    for i in range(num_hidden):
        w = param_refs[2 * i][...]
        b = param_refs[2 * i + 1][...]
        # MXU matmul with f32 accumulation.
        y = jnp.dot(h, w, preferred_element_type=jnp.float32)
        if apply_bn:
            # Bias add is a no-op under mean subtraction -> skip it.
            # BatchNorm1d, training mode, gamma=1 / beta=0, biased variance.
            ym = y if row_mask is None else y * row_mask
            mean = jnp.sum(ym, axis=0, keepdims=True) * inv_b
            diff = y - mean
            diff_m = diff if row_mask is None else diff * row_mask
            var = jnp.sum(diff_m * diff_m, axis=0, keepdims=True) * inv_b
            y = diff * jax.lax.rsqrt(var + bn_eps)
        else:
            y = y + b
        # ELU(alpha=1): y if y > 0 else exp(y) - 1   (exp on the EUP; where on VPU)
        h = jnp.where(y > 0, y, jnp.exp(y) - 1.0)

    # Output layer: plain Linear, no activation (no softmax — matches module).
    w_out = param_refs[-2][...]
    b_out = param_refs[-1][...]
    out = jnp.dot(h, w_out, preferred_element_type=jnp.float32) + b_out
    out_ref[...] = out.astype(out_ref.dtype)


def init_mlp_params(key, n_inputs, n_hidden, n_classes):
    """Matches the PyTorch module's init: Kaiming-normal (fan_in) weights,
    nn.Linear default uniform(-1/sqrt(fan_in), 1/sqrt(fan_in)) biases.
    Weights are stored transposed as (in, out) so the kernel computes x @ W."""
    weights, biases = [], []
    dims = [n_inputs] + list(n_hidden) + [n_classes]
    for i in range(len(dims) - 1):
        fan_in, fan_out = dims[i], dims[i + 1]
        key, kw, kb = jax.random.split(key, 3)
        std = (2.0 / fan_in) ** 0.5
        w = std * jax.random.normal(kw, (fan_in, fan_out), dtype=jnp.float32)
        bound = 1.0 / (fan_in ** 0.5)
        b = jax.random.uniform(
            kb, (fan_out,), minval=-bound, maxval=bound, dtype=jnp.float32
        )
        weights.append(w)
        biases.append(b)
    return weights, biases


def mlp_forward(x, params, *, use_batch_norm=False):
    """Forward pass identical in semantics to MLP.forward (single fused kernel)."""
    weights, biases = params
    B = x.shape[0]
    x2 = x.reshape(B, -1).astype(jnp.float32)  # x.view(x.size(0), -1)
    n_inputs = x2.shape[1]
    n_classes = weights[-1].shape[1]
    num_hidden = len(weights) - 1

    # Pad batch to a multiple of 8 (f32 sublanes) and all feature dims to a
    # multiple of 128 (lane width) so every vreg/MXU tile is full and every
    # store is an unmasked vst.
    b_pad = _round_up(max(B, 1), 8)
    dims = [n_inputs] + [w.shape[1] for w in weights]
    dims_pad = [_round_up(d, 128) for d in dims]

    x_p = jnp.zeros((b_pad, dims_pad[0]), jnp.float32).at[:B, :n_inputs].set(x2)

    inputs = [x_p]
    in_specs = [pl.BlockSpec(x_p.shape, lambda: (0, 0))]
    for i, (w, b) in enumerate(zip(weights, biases)):
        d_in, d_out = w.shape
        w_p = (
            jnp.zeros((dims_pad[i], dims_pad[i + 1]), jnp.float32)
            .at[:d_in, :d_out]
            .set(w.astype(jnp.float32))
        )
        b_p = (
            jnp.zeros((1, dims_pad[i + 1]), jnp.float32)
            .at[:, :d_out]
            .set(b.astype(jnp.float32).reshape(1, d_out))
        )
        inputs.extend([w_p, b_p])
        in_specs.append(pl.BlockSpec(w_p.shape, lambda: (0, 0)))
        in_specs.append(pl.BlockSpec(b_p.shape, lambda: (0, 0)))

    kernel = partial(
        _mlp_kernel,
        num_hidden=num_hidden,
        apply_bn=use_batch_norm,
        b_real=B,
        bn_eps=1e-5,
    )

    # NOTE: at much larger layer sizes this monolithic-block form would need a
    # tiled (M, N, K) grid with a VMEM accumulator and per-tile BlockSpecs
    # (re-derived for v7x's 64 MiB VMEM); unnecessary at these shapes.
    out_padded = pl.pallas_call(
        kernel,
        out_shape=jax.ShapeDtypeStruct((b_pad, dims_pad[-1]), jnp.float32),
        in_specs=in_specs,
        out_specs=pl.BlockSpec((b_pad, dims_pad[-1]), lambda: (0, 0)),
        compiler_params=pltpu.CompilerParams(vmem_limit_bytes=32 * 1024 * 1024),
    )(*inputs)

    return out_padded[:B, :n_classes]


def _mlp_reference(x, params, *, use_batch_norm=False):
    """Pure-JAX reference with identical semantics (for correctness check)."""
    weights, biases = params
    h = x.reshape(x.shape[0], -1).astype(jnp.float32)
    for i in range(len(weights) - 1):
        y = h @ weights[i] + biases[i]
        if use_batch_norm:
            mean = jnp.mean(y, axis=0, keepdims=True)
            var = jnp.mean((y - mean) ** 2, axis=0, keepdims=True)
            y = (y - mean) * jax.lax.rsqrt(var + 1e-5)
        h = jnp.where(y > 0, y, jnp.exp(y) - 1.0)
    return h @ weights[-1] + biases[-1]


if __name__ == "__main__":
    key = jax.random.PRNGKey(0)
    kx, kp = jax.random.split(key)

    # Small shapes consistent with the module's forward (flattened image input).
    B, C, H, W = 2, 4, 16, 16
    n_inputs = C * H * W          # 1024
    n_hidden = [32, 32]
    n_classes = 10

    x = jax.random.normal(kx, (B, C, H, W), dtype=jnp.float32)
    params = init_mlp_params(kp, n_inputs, n_hidden, n_classes)

    fwd_plain = jax.jit(partial(mlp_forward, use_batch_norm=False))
    fwd_bn = jax.jit(partial(mlp_forward, use_batch_norm=True))

    # Plain path.
    out = jax.block_until_ready(fwd_plain(x, params))
    assert out.shape == (B, n_classes) and out.dtype == jnp.float32
    ref = _mlp_reference(x, params, use_batch_norm=False)
    assert jnp.allclose(out, ref, rtol=1e-4, atol=1e-4)

    # BatchNorm1d (training mode) path.
    out_bn = jax.block_until_ready(fwd_bn(x, params))
    assert out_bn.shape == (B, n_classes)
    ref_bn = _mlp_reference(x, params, use_batch_norm=True)
    assert jnp.allclose(out_bn, ref_bn, rtol=1e-4, atol=1e-4)

    print("KERNEL_OK")
</pallas_src>

<mosaic_0001>
module attributes {stable_mosaic.version = 11 : i64} {
  func.func @_mlp_kernel(%arg0: memref<8x1024xf32, #tpu.memory_space<vmem>>, %arg1: memref<1024x128xf32, #tpu.memory_space<vmem>>, %arg2: memref<1x128xf32, #tpu.memory_space<vmem>>, %arg3: memref<128x128xf32, #tpu.memory_space<vmem>>, %arg4: memref<1x128xf32, #tpu.memory_space<vmem>>, %arg5: memref<128x128xf32, #tpu.memory_space<vmem>>, %arg6: memref<1x128xf32, #tpu.memory_space<vmem>>, %arg7: memref<8x128xf32, #tpu.memory_space<vmem>>) attributes {dimension_semantics = [], scalar_prefetch = 0 : i64, scratch_operands = 0 : i64, tpu.core_type = #tpu.core_type<tc>} {
    %c0 = arith.constant 0 : index
    %c0_0 = arith.constant 0 : index
    %0 = vector.load %arg0[%c0, %c0_0] : memref<8x1024xf32, #tpu.memory_space<vmem>>, vector<8x1024xf32>
    %c0_1 = arith.constant 0 : index
    %c0_2 = arith.constant 0 : index
    %1 = vector.load %arg1[%c0_1, %c0_2] : memref<1024x128xf32, #tpu.memory_space<vmem>>, vector<1024x128xf32>
    %c0_3 = arith.constant 0 : index
    %c0_4 = arith.constant 0 : index
    %2 = vector.load %arg2[%c0_3, %c0_4] : memref<1x128xf32, #tpu.memory_space<vmem>>, vector<1x128xf32>
    %cst = arith.constant dense<0.000000e+00> : vector<8x128xf32>
    %3 = tpu.matmul %0, %1, %cst {dimension_numbers = #tpu.dot_dimension_numbers<[1], [0], [0], [1], [0, 0, 1, 1], [], []>} : vector<8x1024xf32>, vector<1024x128xf32>, vector<8x128xf32> -> vector<8x128xf32>
    %4 = vector.broadcast %2 : vector<1x128xf32> to vector<8x128xf32>
    %5 = arith.addf %3, %4 : vector<8x128xf32>
    %cst_5 = arith.constant 0.000000e+00 : f32
    %6 = vector.broadcast %cst_5 : f32 to vector<8x128xf32>
    %7 = arith.cmpf ogt, %5, %6 : vector<8x128xf32>
    %8 = math.exp %5 : vector<8x128xf32>
    %cst_6 = arith.constant 1.000000e+00 : f32
    %9 = vector.broadcast %cst_6 : f32 to vector<8x128xf32>
    %10 = arith.subf %8, %9 : vector<8x128xf32>
    %11 = arith.select %7, %5, %10 : vector<8x128xi1>, vector<8x128xf32>
    %c0_7 = arith.constant 0 : index
    %c0_8 = arith.constant 0 : index
    %12 = vector.load %arg3[%c0_7, %c0_8] : memref<128x128xf32, #tpu.memory_space<vmem>>, vector<128x128xf32>
    %c0_9 = arith.constant 0 : index
    %c0_10 = arith.constant 0 : index
    %13 = vector.load %arg4[%c0_9, %c0_10] : memref<1x128xf32, #tpu.memory_space<vmem>>, vector<1x128xf32>
    %cst_11 = arith.constant dense<0.000000e+00> : vector<8x128xf32>
    %14 = tpu.matmul %11, %12, %cst_11 {dimension_numbers = #tpu.dot_dimension_numbers<[1], [0], [0], [1], [0, 0, 1, 1], [], []>} : vector<8x128xf32>, vector<128x128xf32>, vector<8x128xf32> -> vector<8x128xf32>
    %15 = vector.broadcast %13 : vector<1x128xf32> to vector<8x128xf32>
    %16 = arith.addf %14, %15 : vector<8x128xf32>
    %cst_12 = arith.constant 0.000000e+00 : f32
    %17 = vector.broadcast %cst_12 : f32 to vector<8x128xf32>
    %18 = arith.cmpf ogt, %16, %17 : vector<8x128xf32>
    %19 = math.exp %16 : vector<8x128xf32>
    %cst_13 = arith.constant 1.000000e+00 : f32
    %20 = vector.broadcast %cst_13 : f32 to vector<8x128xf32>
    %21 = arith.subf %19, %20 : vector<8x128xf32>
    %22 = arith.select %18, %16, %21 : vector<8x128xi1>, vector<8x128xf32>
    %c0_14 = arith.constant 0 : index
    %c0_15 = arith.constant 0 : index
    %23 = vector.load %arg5[%c0_14, %c0_15] : memref<128x128xf32, #tpu.memory_space<vmem>>, vector<128x128xf32>
    %c0_16 = arith.constant 0 : index
    %c0_17 = arith.constant 0 : index
    %24 = vector.load %arg6[%c0_16, %c0_17] : memref<1x128xf32, #tpu.memory_space<vmem>>, vector<1x128xf32>
    %cst_18 = arith.constant dense<0.000000e+00> : vector<8x128xf32>
    %25 = tpu.matmul %22, %23, %cst_18 {dimension_numbers = #tpu.dot_dimension_numbers<[1], [0], [0], [1], [0, 0, 1, 1], [], []>} : vector<8x128xf32>, vector<128x128xf32>, vector<8x128xf32> -> vector<8x128xf32>
    %26 = vector.broadcast %24 : vector<1x128xf32> to vector<8x128xf32>
    %27 = arith.addf %25, %26 : vector<8x128xf32>
    %c0_19 = arith.constant 0 : index
    %c0_20 = arith.constant 0 : index
    %28 = vector.load %arg7[%c0_19, %c0_20] : memref<8x128xf32, #tpu.memory_space<vmem>>, vector<8x128xf32>
    tpu.vector_store %arg7[%c0_19, %c0_20], %27 {strides = array<i32>} : memref<8x128xf32, #tpu.memory_space<vmem>>, vector<8x128xf32>,
    return
  }
}

</mosaic_0001>

<bundles_post_ra>
// kernel: mlp_forward.1
= control target key start
LH: loop header
LB: loop body
LE: loop exit
PB: predicated region body
PF: predicated region fallthrough
CT: control target
= control target key end

     0   :  { %vm906_vm0 = vmmov 0   ;;  %s1497_s1 = inlined_call_operand.vmem [shape: f32[1024,128], index: 1, kind: input, shape index: {}]   ;;  %s1498_s0 = inlined_call_operand.vmem [shape: f32[8,1024], index: 0, kind: input, shape index: {}]   ;;  %s1499_s3 = inlined_call_operand.vmem [shape: f32[128,128], index: 3, kind: input, shape index: {}]   ;;  %s1500_s5 = inlined_call_operand.vmem [shape: f32[128,128], index: 5, kind: input, shape index: {}]   ;;  %s1501_s2 = inlined_call_operand.vmem [shape: f32[1,128], index: 2, kind: input, shape index: {}]   ;;  %s1502_s4 = inlined_call_operand.vmem [shape: f32[1,128], index: 4, kind: input, shape index: {}]   ;;  %s1503_s6 = inlined_call_operand.vmem [shape: f32[1,128], index: 6, kind: input, shape index: {}]   ;;  %s1504_s7 = inlined_call_operand.vmem [shape: f32[8,128], index: 7, kind: output, shape index: {}]  }
   0x1   :  { %v65_v0 = vld [vmem:[%s1497_s1 + $0xf8] sm:$0xff]  ;;  %v64_v4 = vld [vmem:[%s1497_s1 + $0xf0] sm:$0xff]  ;;  %v63_v8 = vld [vmem:[%s1497_s1 + $0xe8] sm:$0xff] }
   0x2   :  { %v97_v1 = vld [vmem:[%s1497_s1 + $0x1f8] sm:$0xff]  ;;  %655 = vmatprep.subr.mxu0 %v65_v0  ;;  %v96_v5 = vld [vmem:[%s1497_s1 + $0x1f0] sm:$0xff]  ;;  %v95_v9 = vld [vmem:[%s1497_s1 + $0x1e8] sm:$0xff] }
   0x3   :  { %v49_v2 = vld [vmem:[%s1497_s1 + $0x78] sm:$0xff]  ;;  %690 = vmatprep.subr.mxu1 %v97_v1  ;;  %v48_v6 = vld [vmem:[%s1497_s1 + $0x70] sm:$0xff]  ;;  %v47_v10 = vld [vmem:[%s1497_s1 + $0x68] sm:$0xff] }
   0x4   :  { %v81_v3 = vld [vmem:[%s1497_s1 + $0x178] sm:$0xff]  ;;  %656 = vmatpush3.msra.mxu0 %v49_v2  ;;  %v80_v7 = vld [vmem:[%s1497_s1 + $0x170] sm:$0xff]  ;;  %v79_v11 = vld [vmem:[%s1497_s1 + $0x168] sm:$0xff] }
   0x5   :  { %691 = vmatpush3.msra.mxu1 %v81_v3  ;;  %657 = vmatprep.subr.mxu0 %v64_v4  ;;  %v62_v12 = vld [vmem:[%s1497_s1 + $0xe0] sm:$0xff]  ;;  %v61_v16 = vld [vmem:[%s1497_s1 + $0xd8] sm:$0xff]  ;;  %v60_v20 = vld [vmem:[%s1497_s1 + $0xd0] sm:$0xff] }
   0x6   :  { %692 = vmatprep.subr.mxu1 %v96_v5  ;;  %658 = vmatpush3.msra.mxu0 %v48_v6  ;;  %v94_v13 = vld [vmem:[%s1497_s1 + $0x1e0] sm:$0xff]  ;;  %v93_v17 = vld [vmem:[%s1497_s1 + $0x1d8] sm:$0xff]  ;;  %v92_v21 = vld [vmem:[%s1497_s1 + $0x1d0] sm:$0xff] }
   0x7   :  { %693 = vmatpush3.msra.mxu1 %v80_v7  ;;  %659 = vmatprep.subr.mxu0 %v63_v8  ;;  %v46_v14 = vld [vmem:[%s1497_s1 + $0x60] sm:$0xff]  ;;  %v45_v18 = vld [vmem:[%s1497_s1 + $0x58] sm:$0xff]  ;;  %v44_v22 = vld [vmem:[%s1497_s1 + $0x50] sm:$0xff] }
   0x8   :  { %694 = vmatprep.subr.mxu1 %v95_v9  ;;  %v78_v15 = vld [vmem:[%s1497_s1 + $0x160] sm:$0xff]  ;;  %660 = vmatpush3.msra.mxu0 %v47_v10  ;;  %v77_v19 = vld [vmem:[%s1497_s1 + $0x158] sm:$0xff]  ;;  %v76_v23 = vld [vmem:[%s1497_s1 + $0x150] sm:$0xff] }
   0x9   :  { %695 = vmatpush3.msra.mxu1 %v79_v11  ;;  %661 = vmatprep.subr.mxu0 %v62_v12  ;;  %v59_v24 = vld [vmem:[%s1497_s1 + $0xc8] sm:$0xff]  ;;  %v58_v28 = vld [vmem:[%s1497_s1 + $0xc0] sm:$0xff]  ;;  %v57_v32 = vld [vmem:[%s1497_s1 + $0xb8] sm:$0xff] }
   0xa   :  { %696 = vmatprep.subr.mxu1 %v94_v13  ;;  %662 = vmatpush3.msra.mxu0 %v46_v14  ;;  %v91_v25 = vld [vmem:[%s1497_s1 + $0x1c8] sm:$0xff]  ;;  %v90_v29 = vld [vmem:[%s1497_s1 + $0x1c0] sm:$0xff]  ;;  %v89_v33 = vld [vmem:[%s1497_s1 + $0x1b8] sm:$0xff] }
   0xb   :  { %697 = vmatpush3.msra.mxu1 %v78_v15  ;;  %663 = vmatprep.subr.mxu0 %v61_v16  ;;  %v43_v26 = vld [vmem:[%s1497_s1 + $0x48] sm:$0xff]  ;;  %v42_v30 = vld [vmem:[%s1497_s1 + $0x40] sm:$0xff]  ;;  %v41_v34 = vld [vmem:[%s1497_s1 + $0x38] sm:$0xff] }
   0xc   :  { %698 = vmatprep.subr.mxu1 %v93_v17  ;;  %664 = vmatpush3.msra.mxu0 %v45_v18  ;;  %v75_v27 = vld [vmem:[%s1497_s1 + $0x148] sm:$0xff]  ;;  %v74_v31 = vld [vmem:[%s1497_s1 + $0x140] sm:$0xff]  ;;  %v73_v35 = vld [vmem:[%s1497_s1 + $0x138] sm:$0xff] }
   0xd   :  { %699 = vmatpush3.msra.mxu1 %v77_v19  ;;  %665 = vmatprep.subr.mxu0 %v60_v20  ;;  %v56_v36 = vld [vmem:[%s1497_s1 + $0xb0] sm:$0xff]  ;;  %v55_v40 = vld [vmem:[%s1497_s1 + $0xa8] sm:$0xff]  ;;  %v54_v44 = vld [vmem:[%s1497_s1 + $0xa0] sm:$0xff] }
   0xe   :  { %700 = vmatprep.subr.mxu1 %v92_v21  ;;  %666 = vmatpush3.msra.mxu0 %v44_v22  ;;  %v88_v37 = vld [vmem:[%s1497_s1 + $0x1b0] sm:$0xff]  ;;  %v87_v41 = vld [vmem:[%s1497_s1 + $0x1a8] sm:$0xff]  ;;  %v86_v45 = vld [vmem:[%s1497_s1 + $0x1a0] sm:$0xff] }
   0xf   :  { %701 = vmatpush3.msra.mxu1 %v76_v23  ;;  %667 = vmatprep.subr.mxu0 %v59_v24  ;;  %v40_v38 = vld [vmem:[%s1497_s1 + $0x30] sm:$0xff]  ;;  %v39_v42 = vld [vmem:[%s1497_s1 + $0x28] sm:$0xff]  ;;  %v38_v46 = vld [vmem:[%s1497_s1 + $0x20] sm:$0xff] }
  0x10   :  { %702 = vmatprep.subr.mxu1 %v91_v25  ;;  %668 = vmatpush3.msra.mxu0 %v43_v26  ;;  %v72_v39 = vld [vmem:[%s1497_s1 + $0x130] sm:$0xff]  ;;  %v71_v43 = vld [vmem:[%s1497_s1 + $0x128] sm:$0xff]  ;;  %v70_v47 = vld [vmem:[%s1497_s1 + $0x120] sm:$0xff] }
  0x11   :  { %703 = vmatpush3.msra.mxu1 %v75_v27  ;;  %669 = vmatprep.subr.mxu0 %v58_v28  ;;  %v53_v48 = vld [vmem:[%s1497_s1 + $0x98] sm:$0xff]  ;;  %v52_v52 = vld [vmem:[%s1497_s1 + $0x90] sm:$0xff]  ;;  %v51_v56 = vld [vmem:[%s1497_s1 + $0x88] sm:$0xff] }
  0x12   :  { %704 = vmatprep.subr.mxu1 %v90_v29  ;;  %670 = vmatpush3.msra.mxu0 %v42_v30  ;;  %v85_v49 = vld [vmem:[%s1497_s1 + $0x198] sm:$0xff]  ;;  %v84_v53 = vld [vmem:[%s1497_s1 + $0x190] sm:$0xff]  ;;  %v83_v57 = vld [vmem:[%s1497_s1 + $0x188] sm:$0xff] }
  0x13   :  { %705 = vmatpush3.msra.mxu1 %v74_v31  ;;  %671 = vmatprep.subr.mxu0 %v57_v32  ;;  %v37_v50 = vld [vmem:[%s1497_s1 + $0x18] sm:$0xff]  ;;  %v36_v54 = vld [vmem:[%s1497_s1 + $0x10] sm:$0xff]  ;;  %v35_v58 = vld [vmem:[%s1497_s1 + $0x8] sm:$0xff] }
  0x14   :  { %706 = vmatprep.subr.mxu1 %v89_v33  ;;  %672 = vmatpush3.msra.mxu0 %v41_v34  ;;  %v69_v51 = vld [vmem:[%s1497_s1 + $0x118] sm:$0xff]  ;;  %v68_v55 = vld [vmem:[%s1497_s1 + $0x110] sm:$0xff]  ;;  %v67_v59 = vld [vmem:[%s1497_s1 + $0x108] sm:$0xff] }
  0x15   :  { %707 = vmatpush3.msra.mxu1 %v73_v35  ;;  %673 = vmatprep.subr.mxu0 %v56_v36  ;;  %v50_v60 = vld [vmem:[%s1497_s1 + $0x80] sm:$0xff]  ;;  %v27_v63 = vld [vmem:[%s1498_s0 + $0x8] sm:$0xff]  ;;  %v29_v2 = vld [vmem:[%s1498_s0 + $0x18] sm:$0xff] }
  0x16   :  { %708 = vmatprep.subr.mxu1 %v88_v37  ;;  %674 = vmatpush3.msra.mxu0 %v40_v38  ;;  %v82_v61 = vld [vmem:[%s1497_s1 + $0x180] sm:$0xff]  ;;  %v129_v3 = vld [vmem:[%s1497_s1 + $0x2f8] sm:$0xff]  ;;  %v28_v5 = vld [vmem:[%s1498_s0 + $0x10] sm:$0xff] }
  0x17   :  { %709 = vmatpush3.msra.mxu1 %v72_v39  ;;  %675 = vmatprep.subr.mxu0 %v55_v40  ;;  %v34_v62 = vld [vmem:[%s1497_s1] sm:$0xff]  ;;  %v161_v4 = vld [vmem:[%s1497_s1 + $0x3f8] sm:$0xff]  ;;  %v128_v8 = vld [vmem:[%s1497_s1 + $0x2f0] sm:$0xff] }
  0x18   :  { %710 = vmatprep.subr.mxu1 %v87_v41  ;;  %676 = vmatpush3.msra.mxu0 %v39_v42  ;;  %v66_v0 = vld [vmem:[%s1497_s1 + $0x100] sm:$0xff]  ;;  %v113_v6 = vld [vmem:[%s1497_s1 + $0x278] sm:$0xff]  ;;  %v160_v9 = vld [vmem:[%s1497_s1 + $0x3f0] sm:$0xff] }
  0x19   :  { %711 = vmatpush3.msra.mxu1 %v71_v43  ;;  %677 = vmatprep.subr.mxu0 %v54_v44  ;;  %v26_v1 = vld [vmem:[%s1498_s0] sm:$0xff]  ;;  %v145_v7 = vld [vmem:[%s1497_s1 + $0x378] sm:$0xff]  ;;  %v112_v10 = vld [vmem:[%s1497_s1 + $0x270] sm:$0xff] }
  0x1a   :  { %712 = vmatprep.subr.mxu1 %v86_v45  ;;  %678 = vmatpush3.msra.mxu0 %v38_v46  ;;  %v144_v11 = vld [vmem:[%s1497_s1 + $0x370] sm:$0xff]  ;;  %v127_v12 = vld [vmem:[%s1497_s1 + $0x2e8] sm:$0xff]  ;;  %v126_v16 = vld [vmem:[%s1497_s1 + $0x2e0] sm:$0xff] }
  0x1b   :  { %713 = vmatpush3.msra.mxu1 %v70_v47  ;;  %679 = vmatprep.subr.mxu0 %v53_v48  ;;  %v159_v13 = vld [vmem:[%s1497_s1 + $0x3e8] sm:$0xff]  ;;  %v158_v17 = vld [vmem:[%s1497_s1 + $0x3e0] sm:$0xff]  ;;  %v125_v20 = vld [vmem:[%s1497_s1 + $0x2d8] sm:$0xff] }
  0x1c   :  { %714 = vmatprep.subr.mxu1 %v85_v49  ;;  %680 = vmatpush3.msra.mxu0 %v37_v50  ;;  %v111_v14 = vld [vmem:[%s1497_s1 + $0x268] sm:$0xff]  ;;  %v110_v18 = vld [vmem:[%s1497_s1 + $0x260] sm:$0xff]  ;;  %v157_v21 = vld [vmem:[%s1497_s1 + $0x3d8] sm:$0xff] }
  0x1d   :  { %715 = vmatpush3.msra.mxu1 %v69_v51  ;;  %681 = vmatprep.subr.mxu0 %v52_v52  ;;  %v143_v15 = vld [vmem:[%s1497_s1 + $0x368] sm:$0xff]  ;;  %v142_v19 = vld [vmem:[%s1497_s1 + $0x360] sm:$0xff]  ;;  %v109_v22 = vld [vmem:[%s1497_s1 + $0x258] sm:$0xff] }
  0x1e   :  { %716 = vmatprep.subr.mxu1 %v84_v53  ;;  %682 = vmatpush3.msra.mxu0 %v36_v54  ;;  %v141_v23 = vld [vmem:[%s1497_s1 + $0x358] sm:$0xff]  ;;  %v124_v24 = vld [vmem:[%s1497_s1 + $0x2d0] sm:$0xff]  ;;  %v123_v28 = vld [vmem:[%s1497_s1 + $0x2c8] sm:$0xff] }
  0x1f   :  { %717 = vmatpush3.msra.mxu1 %v68_v55  ;;  %683 = vmatprep.subr.mxu0 %v51_v56  ;;  %v156_v25 = vld [vmem:[%s1497_s1 + $0x3d0] sm:$0xff]  ;;  %v155_v29 = vld [vmem:[%s1497_s1 + $0x3c8] sm:$0xff]  ;;  %v122_v32 = vld [vmem:[%s1497_s1 + $0x2c0] sm:$0xff] }
  0x20   :  { %718 = vmatprep.subr.mxu1 %v83_v57  ;;  %684 = vmatpush3.msra.mxu0 %v35_v58  ;;  %v108_v26 = vld [vmem:[%s1497_s1 + $0x250] sm:$0xff]  ;;  %v107_v30 = vld [vmem:[%s1497_s1 + $0x248] sm:$0xff]  ;;  %v154_v33 = vld [vmem:[%s1497_s1 + $0x3c0] sm:$0xff] }
  0x21   :  { %719 = vmatpush3.msra.mxu1 %v67_v59  ;;  %685 = vmatprep.subr.mxu0 %v50_v60  ;;  %v140_v27 = vld [vmem:[%s1497_s1 + $0x350] sm:$0xff]  ;;  %v139_v31 = vld [vmem:[%s1497_s1 + $0x348] sm:$0xff]  ;;  %v106_v34 = vld [vmem:[%s1497_s1 + $0x240] sm:$0xff] }
  0x22   :  { %720 = vmatprep.subr.mxu1 %v82_v61  ;;  %686 = vmatpush3.msra.mxu0 %v34_v62  ;;  %v138_v35 = vld [vmem:[%s1497_s1 + $0x340] sm:$0xff]  ;;  %v121_v36 = vld [vmem:[%s1497_s1 + $0x2b8] sm:$0xff]  ;;  %v120_v40 = vld [vmem:[%s1497_s1 + $0x2b0] sm:$0xff] }
  0x23   :  { %233 = vmatprep.mubr.f32.mxu0 %v27_v63  ;;  %721 = vmatpush3.msra.mxu1 %v66_v0  ;;  %v153_v37 = vld [vmem:[%s1497_s1 + $0x3b8] sm:$0xff]  ;;  %v152_v41 = vld [vmem:[%s1497_s1 + $0x3b0] sm:$0xff]  ;;  %v119_v44 = vld [vmem:[%s1497_s1 + $0x2a8] sm:$0xff] }
  0x24   :  { %234 = vmatmul.mubr.f32.vlgmr.msra.gmra.mxu0 %v26_v1  ;;  %303 = vmatprep.mubr.f32.mxu1 %v29_v2  ;;  %v105_v38 = vld [vmem:[%s1497_s1 + $0x238] sm:$0xff]  ;;  %v104_v42 = vld [vmem:[%s1497_s1 + $0x230] sm:$0xff]  ;;  %v151_v45 = vld [vmem:[%s1497_s1 + $0x3a8] sm:$0xff] }
  0x25   :  { %725 = vmatprep.subr.mxu0 %v129_v3  ;;  %760 = vmatprep.subr.mxu1 %v161_v4  ;;  %v137_v39 = vld [vmem:[%s1497_s1 + $0x338] sm:$0xff]  ;;  %v136_v43 = vld [vmem:[%s1497_s1 + $0x330] sm:$0xff]  ;;  %v103_v46 = vld [vmem:[%s1497_s1 + $0x228] sm:$0xff] }
  0x26   :  { %304 = vmatmul.mubr.f32.vlgmr.msra.gmra.mxu1 %v28_v5  ;;  %726 = vmatpush3.msra.mxu0 %v113_v6  ;;  %v135_v47 = vld [vmem:[%s1497_s1 + $0x328] sm:$0xff]  ;;  %v118_v48 = vld [vmem:[%s1497_s1 + $0x2a0] sm:$0xff]  ;;  %v117_v52 = vld [vmem:[%s1497_s1 + $0x298] sm:$0xff] }
  0x27   :  { %761 = vmatpush3.msra.mxu1 %v145_v7  ;;  %727 = vmatprep.subr.mxu0 %v128_v8  ;;  %v150_v49 = vld [vmem:[%s1497_s1 + $0x3a0] sm:$0xff]  ;;  %v149_v53 = vld [vmem:[%s1497_s1 + $0x398] sm:$0xff]  ;;  %v116_v56 = vld [vmem:[%s1497_s1 + $0x290] sm:$0xff]  ;;  %v905_v8 = vmov 0.0  }
  0x28   :  { %762 = vmatprep.subr.mxu1 %v160_v9  ;;  %728 = vmatpush3.msra.mxu0 %v112_v10  ;;  %v102_v50 = vld [vmem:[%s1497_s1 + $0x220] sm:$0xff]  ;;  %v101_v54 = vld [vmem:[%s1497_s1 + $0x218] sm:$0xff]  ;;  %v148_v57 = vld [vmem:[%s1497_s1 + $0x390] sm:$0xff] }
  0x29   :  { %763 = vmatpush3.msra.mxu1 %v144_v11  ;;  %729 = vmatprep.subr.mxu0 %v127_v12  ;;  %v134_v51 = vld [vmem:[%s1497_s1 + $0x320] sm:$0xff]  ;;  %v133_v55 = vld [vmem:[%s1497_s1 + $0x318] sm:$0xff]  ;;  %v100_v58 = vld [vmem:[%s1497_s1 + $0x210] sm:$0xff] }
  0x2a   :  { %764 = vmatprep.subr.mxu1 %v159_v13  ;;  %730 = vmatpush3.msra.mxu0 %v111_v14  ;;  %v132_v59 = vld [vmem:[%s1497_s1 + $0x310] sm:$0xff]  ;;  %v115_v60 = vld [vmem:[%s1497_s1 + $0x288] sm:$0xff]  ;;  %v114_v0 = vld [vmem:[%s1497_s1 + $0x280] sm:$0xff] }
  0x2b   :  { %765 = vmatpush3.msra.mxu1 %v143_v15  ;;  %731 = vmatprep.subr.mxu0 %v126_v16  ;;  %v147_v61 = vld [vmem:[%s1497_s1 + $0x388] sm:$0xff]  ;;  %v146_v1 = vld [vmem:[%s1497_s1 + $0x380] sm:$0xff]  ;;  %v33_v5 = vld [vmem:[%s1498_s0 + $0x38] sm:$0xff] }
  0x2c   :  { %766 = vmatprep.subr.mxu1 %v158_v17  ;;  %732 = vmatpush3.msra.mxu0 %v110_v18  ;;  %v99_v62 = vld [vmem:[%s1497_s1 + $0x208] sm:$0xff]  ;;  %v98_v2 = vld [vmem:[%s1497_s1 + $0x200] sm:$0xff]  ;;  %v32_v7 = vld [vmem:[%s1498_s0 + $0x30] sm:$0xff] }
  0x2d   :  { %767 = vmatpush3.msra.mxu1 %v142_v19  ;;  %733 = vmatprep.subr.mxu0 %v125_v20  ;;  %v131_v63 = vld [vmem:[%s1497_s1 + $0x308] sm:$0xff]  ;;  %v130_v4 = vld [vmem:[%s1497_s1 + $0x300] sm:$0xff]  ;;  %v469_v9 = vld [vmem:[%s1499_s3 + $0x78] sm:$0xff] }
  0x2e   :  { %768 = vmatprep.subr.mxu1 %v157_v21  ;;  %734 = vmatpush3.msra.mxu0 %v109_v22  ;;  %v31_v3 = vld [vmem:[%s1498_s0 + $0x28] sm:$0xff]  ;;  %v30_v6 = vld [vmem:[%s1498_s0 + $0x20] sm:$0xff]  ;;  %v468_v10 = vld [vmem:[%s1499_s3 + $0x70] sm:$0xff] }
  0x2f   :  { %769 = vmatpush3.msra.mxu1 %v141_v23  ;;  %735 = vmatprep.subr.mxu0 %v124_v24  ;;  %v467_v11 = vld [vmem:[%s1499_s3 + $0x68] sm:$0xff]  ;;  %v466_v12 = vld [vmem:[%s1499_s3 + $0x60] sm:$0xff]  ;;  %v465_v13 = vld [vmem:[%s1499_s3 + $0x58] sm:$0xff] }
  0x30   :  { %770 = vmatprep.subr.mxu1 %v156_v25  ;;  %736 = vmatpush3.msra.mxu0 %v108_v26  ;;  %v464_v14 = vld [vmem:[%s1499_s3 + $0x50] sm:$0xff]  ;;  %v463_v15 = vld [vmem:[%s1499_s3 + $0x48] sm:$0xff]  ;;  %v462_v16 = vld [vmem:[%s1499_s3 + $0x40] sm:$0xff] }
  0x31   :  { %771 = vmatpush3.msra.mxu1 %v140_v27  ;;  %737 = vmatprep.subr.mxu0 %v123_v28  ;;  %v461_v17 = vld [vmem:[%s1499_s3 + $0x38] sm:$0xff]  ;;  %v460_v18 = vld [vmem:[%s1499_s3 + $0x30] sm:$0xff]  ;;  %v459_v19 = vld [vmem:[%s1499_s3 + $0x28] sm:$0xff] }
  0x32   :  { %772 = vmatprep.subr.mxu1 %v155_v29  ;;  %738 = vmatpush3.msra.mxu0 %v107_v30  ;;  %v458_v20 = vld [vmem:[%s1499_s3 + $0x20] sm:$0xff]  ;;  %v457_v21 = vld [vmem:[%s1499_s3 + $0x18] sm:$0xff]  ;;  %v456_v22 = vld [vmem:[%s1499_s3 + $0x10] sm:$0xff] }
  0x33   :  { %773 = vmatpush3.msra.mxu1 %v139_v31  ;;  %739 = vmatprep.subr.mxu0 %v122_v32  ;;  %v455_v23 = vld [vmem:[%s1499_s3 + $0x8] sm:$0xff]  ;;  %v454_v24 = vld [vmem:[%s1499_s3] sm:$0xff]  ;;  %v567_v25 = vld [vmem:[%s1500_s5 + $0x78] sm:$0xff] }
  0x34   :  { %774 = vmatprep.subr.mxu1 %v154_v33  ;;  %740 = vmatpush3.msra.mxu0 %v106_v34  ;;  %v566_v26 = vld [vmem:[%s1500_s5 + $0x70] sm:$0xff]  ;;  %v565_v27 = vld [vmem:[%s1500_s5 + $0x68] sm:$0xff]  ;;  %v564_v28 = vld [vmem:[%s1500_s5 + $0x60] sm:$0xff] }
  0x35   :  { %775 = vmatpush3.msra.mxu1 %v138_v35  ;;  %741 = vmatprep.subr.mxu0 %v121_v36  ;;  %v563_v29 = vld [vmem:[%s1500_s5 + $0x58] sm:$0xff]  ;;  %v650_v34 = vld [vmem:[%s1501_s2] ss:$0 sm:$0xff] }
  0x36   :  { %776 = vmatprep.subr.mxu1 %v153_v37  ;;  %742 = vmatpush3.msra.mxu0 %v105_v38 }
  0x37   :  { %777 = vmatpush3.msra.mxu1 %v137_v39  ;;  %743 = vmatprep.subr.mxu0 %v120_v40 }
  0x38   :  { %778 = vmatprep.subr.mxu1 %v152_v41  ;;  %744 = vmatpush3.msra.mxu0 %v104_v42 }
  0x39   :  { %779 = vmatpush3.msra.mxu1 %v136_v43  ;;  %745 = vmatprep.subr.mxu0 %v119_v44 }
  0x3a   :  { %780 = vmatprep.subr.mxu1 %v151_v45  ;;  %746 = vmatpush3.msra.mxu0 %v103_v46 }
  0x3b   :  { %781 = vmatpush3.msra.mxu1 %v135_v47  ;;  %747 = vmatprep.subr.mxu0 %v118_v48 }
  0x3c   :  { %782 = vmatprep.subr.mxu1 %v150_v49  ;;  %748 = vmatpush3.msra.mxu0 %v102_v50 }
  0x3d   :  { %783 = vmatpush3.msra.mxu1 %v134_v51  ;;  %749 = vmatprep.subr.mxu0 %v117_v52  ;;  %v562_v51 = vld [vmem:[%s1500_s5 + $0x50] sm:$0xff]  ;;  %v561_v52 = vld [vmem:[%s1500_s5 + $0x48] sm:$0xff] }
  0x3e   :  { %784 = vmatprep.subr.mxu1 %v149_v53  ;;  %750 = vmatpush3.msra.mxu0 %v101_v54  ;;  %v560_v53 = vld [vmem:[%s1500_s5 + $0x40] sm:$0xff]  ;;  %v559_v54 = vld [vmem:[%s1500_s5 + $0x38] sm:$0xff] }
  0x3f   :  { %785 = vmatpush3.msra.mxu1 %v133_v55  ;;  %751 = vmatprep.subr.mxu0 %v116_v56  ;;  %v558_v55 = vld [vmem:[%s1500_s5 + $0x30] sm:$0xff]  ;;  %v557_v56 = vld [vmem:[%s1500_s5 + $0x28] sm:$0xff] }
  0x40   :  { %786 = vmatprep.subr.mxu1 %v148_v57  ;;  %752 = vmatpush3.msra.mxu0 %v100_v58  ;;  %v556_v57 = vld [vmem:[%s1500_s5 + $0x20] sm:$0xff]  ;;  %v555_v58 = vld [vmem:[%s1500_s5 + $0x18] sm:$0xff] }
  0x41   :  { %787 = vmatpush3.msra.mxu1 %v132_v59  ;;  %753 = vmatprep.subr.mxu0 %v115_v60  ;;  %v554_v59 = vld [vmem:[%s1500_s5 + $0x10] sm:$0xff]  ;;  %v553_v60 = vld [vmem:[%s1500_s5 + $0x8] sm:$0xff] }
  0x42   :  { %788 = vmatprep.subr.mxu1 %v147_v61  ;;  %754 = vmatpush3.msra.mxu0 %v99_v62  ;;  %v552_v61 = vld [vmem:[%s1500_s5] sm:$0xff] }
  0x43   :  { %789 = vmatpush3.msra.mxu1 %v131_v63  ;;  %755 = vmatprep.subr.mxu0 %v114_v0  ;;  %v652_v62 = vld [vmem:[%s1502_s4] ss:$0 sm:$0xff] }
  0x44   :  { %790 = vmatprep.subr.mxu1 %v146_v1  ;;  %756 = vmatpush3.msra.mxu0 %v98_v2 }
  0x45   :  { %373 = vmatprep.mubr.f32.mxu0 %v31_v3  ;;  %791 = vmatpush3.msra.mxu1 %v130_v4 }
  0x46   :  { %443 = vmatprep.mubr.f32.mxu1 %v33_v5  ;;  %374 = vmatmul.mubr.f32.vlgmr.msra.gmra.mxu0 %v30_v6  ;;  %v654_v6 = vld [vmem:[%s1503_s6] ss:$0 sm:$0xff] }
  0x47   :  { %444 = vmatmul.mubr.f32.vlgmr.msra.gmra.mxu1 %v32_v7  ;;  %829 = vmatprep.subr.mxu0 %v905_v8 }
  0x48   :  { %864 = vmatprep.subr.mxu1 %v905_v8  ;;  %830 = vmatpush3.msra.mxu0 %v469_v9 }
  0x49   :  { %831 = vmatprep.subr.mxu0 %v905_v8  ;;  %861 = vmatprep.mubr.msk.f32.mxu0 %vm906_vm0, %v905_v8 }
  0x4a   :  { %832 = vmatpush3.msra.mxu0 %v468_v10  ;;  %896 = vmatprep.mubr.msk.f32.mxu1 %vm906_vm0, %v905_v8 }
  0x4b   :  { %833 = vmatprep.subr.mxu0 %v905_v8  ;;  %865 = vmatpush3.msra.mxu1 %v567_v25 }
  0x4c   :  { %834 = vmatpush3.msra.mxu0 %v467_v11  ;;  %866 = vmatprep.subr.mxu1 %v905_v8 }
  0x4d   :  { %835 = vmatprep.subr.mxu0 %v905_v8  ;;  %867 = vmatpush3.msra.mxu1 %v566_v26 }
  0x4e   :  { %836 = vmatpush3.msra.mxu0 %v466_v12  ;;  %868 = vmatprep.subr.mxu1 %v905_v8 }
  0x4f   :  { %837 = vmatprep.subr.mxu0 %v905_v8  ;;  %869 = vmatpush3.msra.mxu1 %v565_v27 }
  0x50   :  { %838 = vmatpush3.msra.mxu0 %v465_v13  ;;  %870 = vmatprep.subr.mxu1 %v905_v8 }
  0x51   :  { %839 = vmatprep.subr.mxu0 %v905_v8  ;;  %871 = vmatpush3.msra.mxu1 %v564_v28 }
  0x52   :  { %840 = vmatpush3.msra.mxu0 %v464_v14  ;;  %872 = vmatprep.subr.mxu1 %v905_v8 }
  0x53   :  { %841 = vmatprep.subr.mxu0 %v905_v8  ;;  %873 = vmatpush3.msra.mxu1 %v563_v29 }
  0x54   :  { %842 = vmatpush3.msra.mxu0 %v463_v15  ;;  %874 = vmatprep.subr.mxu1 %v905_v8 }
  0x55   :  { %843 = vmatprep.subr.mxu0 %v905_v8  ;;  %875 = vmatpush3.msra.mxu1 %v562_v51 }
  0x56   :  { %844 = vmatpush3.msra.mxu0 %v462_v16  ;;  %876 = vmatprep.subr.mxu1 %v905_v8 }
  0x57   :  { %845 = vmatprep.subr.mxu0 %v905_v8  ;;  %877 = vmatpush3.msra.mxu1 %v561_v52 }
  0x58   :  { %846 = vmatpush3.msra.mxu0 %v461_v17  ;;  %878 = vmatprep.subr.mxu1 %v905_v8 }
  0x59   :  { %847 = vmatprep.subr.mxu0 %v905_v8  ;;  %879 = vmatpush3.msra.mxu1 %v560_v53 }
  0x5a   :  { %848 = vmatpush3.msra.mxu0 %v460_v18  ;;  %880 = vmatprep.subr.mxu1 %v905_v8 }
  0x5b   :  { %849 = vmatprep.subr.mxu0 %v905_v8  ;;  %881 = vmatpush3.msra.mxu1 %v559_v54 }
  0x5c   :  { %850 = vmatpush3.msra.mxu0 %v459_v19  ;;  %882 = vmatprep.subr.mxu1 %v905_v8 }
  0x5d   :  { %851 = vmatprep.subr.mxu0 %v905_v8  ;;  %883 = vmatpush3.msra.mxu1 %v558_v55 }
  0x5e   :  { %852 = vmatpush3.msra.mxu0 %v458_v20  ;;  %884 = vmatprep.subr.mxu1 %v905_v8 }
  0x5f   :  { %853 = vmatprep.subr.mxu0 %v905_v8  ;;  %885 = vmatpush3.msra.mxu1 %v557_v56 }
  0x60   :  { %854 = vmatpush3.msra.mxu0 %v457_v21  ;;  %886 = vmatprep.subr.mxu1 %v905_v8 }
  0x61   :  { %855 = vmatprep.subr.mxu0 %v905_v8  ;;  %887 = vmatpush3.msra.mxu1 %v556_v57 }
  0x62   :  { %856 = vmatpush3.msra.mxu0 %v456_v22  ;;  %888 = vmatprep.subr.mxu1 %v905_v8 }
  0x63   :  { %857 = vmatprep.subr.mxu0 %v905_v8  ;;  %889 = vmatpush3.msra.mxu1 %v555_v58 }
  0x64   :  { %858 = vmatpush3.msra.mxu0 %v455_v23  ;;  %890 = vmatprep.subr.mxu1 %v905_v8 }
  0x65   :  { %859 = vmatprep.subr.mxu0 %v905_v8  ;;  %891 = vmatpush3.msra.mxu1 %v554_v59 }
  0x66   :  { %860 = vmatpush3.msra.mxu0 %v454_v24  ;;  %892 = vmatprep.subr.mxu1 %v905_v8 }
  0x67   :  { %893 = vmatpush3.msra.mxu1 %v553_v60 }
  0x68   :  { %894 = vmatprep.subr.mxu1 %v905_v8 }
  0x69   :  { %895 = vmatpush3.msra.mxu1 %v552_v61 }
  0xe4   :  { %v687_v30 = vpop.f32.mrf.mxu0 }
  0xe6   :  { %v722_v31 = vpop.f32.mrf.mxu1  ;;  %v688_v32 = vpop.f32.mrf.mxu0 }
  0xe7   :  { %v689_v33 = vadd.f32 %v688_v32, %v687_v30 }
  0xe8   :  { %v723_v35 = vpop.f32.mrf.mxu1 }
  0xe9   :  { %v236_v36 = vadd.f32 %v689_v33, %v650_v34  ;;  %v724_v37 = vadd.f32 %v723_v35, %v722_v31 }
  0xeb   :  { %v306_v42 = vadd.f32 %v724_v37, %v236_v36 }
 0x106   :  { %v757_v38 = vpop.f32.mrf.mxu0 }
 0x107   :  { %v792_v39 = vpop.f32.mrf.mxu1 }
 0x108   :  { %v758_v40 = vpop.f32.mrf.mxu0 }
 0x109   :  { %v793_v41 = vpop.f32.mrf.mxu1  ;;  %v759_v43 = vadd.f32 %v758_v40, %v757_v38 }
 0x10a   :  { %v794_v45 = vadd.f32 %v793_v41, %v792_v39 }
 0x10b   :  { %v376_v44 = vadd.f32 %v759_v43, %v306_v42 }
 0x10d   :  { %v446_v46 = vadd.f32 %v794_v45, %v376_v44 }
 0x10f   :  { %v450_v47 = vmul.f32 1.442695, %v446_v46  ;;  %vm449_vm1 = vcmp.gt.f32.partialorder %v446_v46, 0.0 }
 0x111   :  { %901 = vpow2.f32 %v450_v47 }
 0x11e   :  { %v902_v48 = vpop.eup %901 }
 0x11f   :  { %v651_v49 = vadd.f32 -1.0, %v902_v48 }
 0x121   :  { %v453_v50 = vsel %vm449_vm1, %v446_v46, %v651_v49 }
 0x122   :  { %862 = vmatmul.mubr.f32.vlgmr.msra.gmra.mxu0 %v453_v50 }
 0x1e2   :  { %v543_v63 = vpop.f32.mrf.mxu0 }
 0x1e3   :  { %v544_v0 = vadd.f32 %v652_v62, %v543_v63 }
 0x1e4   :  { %v863_v1 = vpop.f32.mrf.mxu0 }
 0x1e5   :  { %v548_v2 = vmul.f32 1.442695, %v544_v0  ;;  %vm547_vm2 = vcmp.gt.f32.partialorder %v544_v0, 0.0 }
 0x1e7   :  { %903 = vpow2.f32 %v548_v2 }
 0x1f4   :  { %v904_v3 = vpop.eup %903 }
 0x1f5   :  { %v653_v4 = vadd.f32 -1.0, %v904_v3 }
 0x1f7   :  { %v551_v5 = vsel %vm547_vm2, %v544_v0, %v653_v4 }
 0x1f8   :  { %897 = vmatmul.mubr.f32.vlgmr.msra.gmra.mxu1 %v551_v5 }
 0x2b8   :  { %v641_v7 = vpop.f32.mrf.mxu1 }
 0x2b9   :  { %v642_v8 = vadd.f32 %v654_v6, %v641_v7 }
 0x2ba   :  { %v898_v9 = vpop.f32.mrf.mxu1 }
 0x2bb   :  { %645 = vst [vmem:[%s1504_s7] sm:$0xff] %v642_v8 }

</bundles_post_ra>
